<compile_context>
chip_gen: v7x
topology: tpu7x:2x2x1
jax: 0.10.0
libtpu: 0.0.40
codegen_flags: <defaults>
</compile_context>

<pallas_src>
import jax
import jax.numpy as jnp
from jax import lax
from jax.experimental import pallas as pl
from jax.experimental.pallas import tpu as pltpu

# Problem sizes implied by the module (kernel 3x3, C_in=16, C_out=32).
C_IN = 16
C_OUT = 32
KH = KW = 3
K_DEPTH = KH * KW * C_IN  # 144


def _conv_relu_kernel(p_ref, w_ref, b_ref, o_ref):
    """Pure matmul + bias + ReLU; im2col is done in the wrapper.

    p_ref: (1, 144, M_blk)    im2col patches, rows ordered (kh, kw, cin),
                              M_blk = b_blk*H_out*W_out on the lane axis
    w_ref: (C_OUT, 144)       flattened weight (resident across grid steps)
    b_ref: (C_OUT, 1)
    o_ref: (1, C_OUT, M_blk)  channel-major, spatial M on lanes
    """
    acc = jnp.dot(w_ref[...], p_ref[0],
                  preferred_element_type=jnp.float32)        # (C_OUT, M_blk)
    o_ref[...] = jnp.maximum(acc + b_ref[...], 0.0)[None].astype(o_ref.dtype)


def _num_tensorcores():
    """2 TensorCores per chip on v7x, else 1 (v5e / v6e)."""
    try:
        kind = jax.devices()[0].device_kind.lower()
        if "v7" in kind:
            return 2
    except Exception:
        pass
    return 1


def conv3x3_relu_pallas(x_nchw, weight, bias, *, grid_steps=None):
    """Forward of C4: Conv2d(16, 32, k=3, stride=1, pad=0) + ReLU.

    x_nchw : (N, 16, H, W)  float32
    weight : (32, 16, 3, 3) float32  (PyTorch OIHW)
    bias   : (32,)          float32
    returns: (N, 32, H-2, W-2) float32 (NCHW, like PyTorch)
    """
    N, C, H, W = x_nchw.shape
    assert C == C_IN
    H_out, W_out = H - KH + 1, W - KW + 1
    HW = H_out * W_out

    if grid_steps is None:
        # 1 step on single-TC chips (v5e/v6e); 2 parallel steps on v7x.
        grid_steps = min(_num_tensorcores(), N)
    grid_steps = max(1, min(grid_steps, N))
    b_blk = -(-N // grid_steps)                  # cdiv; pad batch if ragged
    n_pad = grid_steps * b_blk

    x = x_nchw
    if n_pad != N:
        x = jnp.pad(x, ((0, n_pad - N), (0, 0), (0, 0), (0, 0)))

    # --- wrapper-side im2col (tiny arrays; fuses with the layout glue) ------
    # taps: (n_pad, KH*KW, C_IN, H_out, W_out) -> rows ordered (kh, kw, cin).
    taps = jnp.stack([x[:, :, kh:kh + H_out, kw:kw + W_out]
                      for kh in range(KH) for kw in range(KW)], axis=1)
    patches = taps.reshape(n_pad, K_DEPTH, HW)
    patches = patches.reshape(grid_steps, b_blk, K_DEPTH, HW)
    patches = jnp.transpose(patches, (0, 2, 1, 3)).reshape(
        grid_steps, K_DEPTH, b_blk * HW)          # (grid, 144, b_blk*HW)

    # Weight flattened to (C_OUT, 144) with column order (kh, kw, cin),
    # matching the patch row order.
    w2d = jnp.transpose(weight, (0, 2, 3, 1)).reshape(C_OUT, K_DEPTH)
    b2d = bias.reshape(C_OUT, 1)

    m_blk = b_blk * HW
    out = pl.pallas_call(
        _conv_relu_kernel,
        out_shape=jax.ShapeDtypeStruct((grid_steps, C_OUT, m_blk),
                                       x_nchw.dtype),
        grid_spec=pltpu.PrefetchScalarGridSpec(
            num_scalar_prefetch=0,
            grid=(grid_steps,),
            in_specs=[
                pl.BlockSpec((1, K_DEPTH, m_blk), lambda n: (n, 0, 0)),
                pl.BlockSpec((C_OUT, K_DEPTH), lambda n: (0, 0)),
                pl.BlockSpec((C_OUT, 1), lambda n: (0, 0)),
            ],
            out_specs=pl.BlockSpec((1, C_OUT, m_blk), lambda n: (n, 0, 0)),
        ),
        compiler_params=pltpu.CompilerParams(
            dimension_semantics=("parallel",)),
    )(patches, w2d, b2d)

    # (grid, C_OUT, b_blk*HW) -> (N, C_OUT, H_out, W_out).  Already
    # channel-major; only a small (C_OUT, b_blk) axis swap remains (a no-op
    # when b_blk == 1, i.e. the v7x 2-step split).
    out = out.reshape(grid_steps, C_OUT, b_blk, H_out, W_out)
    out = jnp.transpose(out, (0, 2, 1, 3, 4)).reshape(
        n_pad, C_OUT, H_out, W_out)
    return out[:N]


def _reference(x_nchw, weight, bias):
    """Pure-JAX reference (lax conv) for a correctness check."""
    out = lax.conv_general_dilated(
        x_nchw, weight,
        window_strides=(1, 1), padding="VALID",
        dimension_numbers=("NCHW", "OIHW", "NCHW"))
    out = out + bias[None, :, None, None]
    return jnp.maximum(out, 0.0)


if __name__ == "__main__":
    key = jax.random.PRNGKey(0)
    k_x, k_w, k_b = jax.random.split(key, 3)

    # Small shapes consistent with the module: N=2, C_in=16, 16x16 spatial.
    N, H, W = 2, 16, 16
    x = jax.random.normal(k_x, (N, C_IN, H, W), dtype=jnp.float32)

    # Deterministic synthetic parameters (PyTorch-style uniform fan-in init).
    fan_in = C_IN * KH * KW
    bound = 1.0 / (fan_in ** 0.5)
    weight = jax.random.uniform(k_w, (C_OUT, C_IN, KH, KW),
                                minval=-bound, maxval=bound,
                                dtype=jnp.float32)
    bias = jax.random.uniform(k_b, (C_OUT,),
                              minval=-bound, maxval=bound,
                              dtype=jnp.float32)

    out = conv3x3_relu_pallas(x, weight, bias)
    out = jax.block_until_ready(out)

    ref = jax.block_until_ready(_reference(x, weight, bias))
    assert out.shape == (N, C_OUT, H - 2, W - 2)
    assert jnp.allclose(out, ref, atol=1e-3, rtol=1e-3)

    print("KERNEL_OK")
</pallas_src>

<mosaic_0001>
module attributes {stable_mosaic.version = 11 : i64} {
  func.func @_conv_relu_kernel(%arg0: i32, %arg1: memref<1x144x392xf32, #tpu.memory_space<vmem>>, %arg2: memref<32x144xf32, #tpu.memory_space<vmem>>, %arg3: memref<32x1xf32, #tpu.memory_space<vmem>>, %arg4: memref<1x32x392xf32, #tpu.memory_space<vmem>>) attributes {dimension_semantics = [#tpu.dimension_semantics<parallel>], iteration_bounds = array<i64: 1>, scalar_prefetch = 0 : i64, scratch_operands = 0 : i64, tpu.core_type = #tpu.core_type<tc>, window_params = [{transform_indices = @transform_0, window_bounds = array<i64: 1, 144, 392>}, {pipeline_mode = #tpu.pipeline_mode<synchronous>, transform_indices = @transform_1, window_bounds = array<i64: 32, 144>}, {pipeline_mode = #tpu.pipeline_mode<synchronous>, transform_indices = @transform_2, window_bounds = array<i64: 32, 1>}, {transform_indices = @transform_3, window_bounds = array<i64: 1, 32, 392>}]} {
    %c0 = arith.constant 0 : index
    %c0_0 = arith.constant 0 : index
    %0 = vector.load %arg2[%c0, %c0_0] : memref<32x144xf32, #tpu.memory_space<vmem>>, vector<32x144xf32>
    %c0_1 = arith.constant 0 : index
    %c0_2 = arith.constant 0 : index
    %c0_3 = arith.constant 0 : index
    %1 = vector.load %arg1[%c0_1, %c0_2, %c0_3] : memref<1x144x392xf32, #tpu.memory_space<vmem>>, vector<1x144x392xf32>
    %2 = vector.shape_cast %1 : vector<1x144x392xf32> to vector<144x392xf32>
    %cst = arith.constant dense<0.000000e+00> : vector<32x392xf32>
    %3 = tpu.matmul %0, %2, %cst {dimension_numbers = #tpu.dot_dimension_numbers<[1], [0], [0], [1], [0, 0, 1, 1], [], []>} : vector<32x144xf32>, vector<144x392xf32>, vector<32x392xf32> -> vector<32x392xf32>
    %c0_4 = arith.constant 0 : index
    %c0_5 = arith.constant 0 : index
    %4 = vector.load %arg3[%c0_4, %c0_5] : memref<32x1xf32, #tpu.memory_space<vmem>>, vector<32x1xf32>
    %5 = vector.broadcast %4 : vector<32x1xf32> to vector<32x392xf32>
    %6 = arith.addf %3, %5 : vector<32x392xf32>
    %cst_6 = arith.constant 0.000000e+00 : f32
    %7 = vector.broadcast %cst_6 : f32 to vector<32x392xf32>
    %8 = arith.maximumf %6, %7 : vector<32x392xf32>
    %9 = vector.shape_cast %8 : vector<32x392xf32> to vector<1x32x392xf32>
    %c0_7 = arith.constant 0 : index
    %c0_8 = arith.constant 0 : index
    %c0_9 = arith.constant 0 : index
    %10 = vector.load %arg4[%c0_7, %c0_8, %c0_9] : memref<1x32x392xf32, #tpu.memory_space<vmem>>, vector<1x32x392xf32>
    tpu.vector_store %arg4[%c0_7, %c0_8, %c0_9], %9 {strides = array<i32>} : memref<1x32x392xf32, #tpu.memory_space<vmem>>, vector<1x32x392xf32>,
    return
  }
  func.func @transform_0(%arg0: i32) -> (i32, i32, i32) {
    %c0_i32 = arith.constant 0 : i32
    %c0_i32_0 = arith.constant 0 : i32
    %c0_i32_1 = arith.constant 0 : i32
    return %arg0, %c0_i32, %c0_i32_0 : i32, i32, i32
  }
  func.func @transform_1(%arg0: i32) -> (i32, i32) {
    %c0_i32 = arith.constant 0 : i32
    %c0_i32_0 = arith.constant 0 : i32
    %c0_i32_1 = arith.constant 0 : i32
    return %c0_i32, %c0_i32_0 : i32, i32
  }
  func.func @transform_2(%arg0: i32) -> (i32, i32) {
    %c0_i32 = arith.constant 0 : i32
    %c0_i32_0 = arith.constant 0 : i32
    %c0_i32_1 = arith.constant 0 : i32
    return %c0_i32, %c0_i32_0 : i32, i32
  }
  func.func @transform_3(%arg0: i32) -> (i32, i32, i32) {
    %c0_i32 = arith.constant 0 : i32
    %c0_i32_0 = arith.constant 0 : i32
    %c0_i32_1 = arith.constant 0 : i32
    return %arg0, %c0_i32, %c0_i32_0 : i32, i32, i32
  }
}

</mosaic_0001>

<bundles_post_ra>
// kernel: tpu_custom_call.1
= control target key start
LH: loop header
LB: loop body
LE: loop exit
PB: predicated region body
PF: predicated region fallthrough
CT: control target
= control target key end

     0   :  { %8 = vsyncpa [#allocation3], 0  ;;  %s645_s0 = inlined_call_operand.hbm [shape: f32[1,144,392], index: 0, kind: input, shape index: {}]   ;;  %s646_s1 = inlined_call_operand.hbm [shape: f32[32,144], index: 1, kind: input, shape index: {}]   ;;  %s647_s2 = inlined_call_operand.vmem [shape: f32[32,1], index: 2, kind: input, shape index: {}]   ;;  %s648_s3 = inlined_call_operand.hbm [shape: f32[1,32,392], index: 3, kind: output, shape index: {}]  }
   0x1   :  { %9 = vsyncpa [#allocation6], 0 }
   0x2   :  { %10 = vsyncpa [#allocation4], 0  ;;  %s551_s12 = smov [#allocation2]   ;;  %s479_s16 = scalar_lea.hbm %s645_s0, 9216 }
   0x3   :  { %s16_s13 = sshll.u32 %s551_s12, 4  ;;  %p480_p0 = scmp.ne.s32.totalorder %s645_s0, %s479_s16  ;;  %s17_s13 = int_to_ptr.vmem [resolvable:$true] %s16_s13 }
   0x4   :  { %p483_p1 = scmp.lt.u32.totalorder %s479_s16, %s645_s0 }
   0x6   :  { %p485_p2 = pnand %p483_p1, %p480_p0 }
   0x8   :  { %488 = shalt.err (!%p485_p2)
}
   0x9   :  { %s489_s21 = scalar_lea.vmem %s17_s13, 9216  ;;  %p494_p4 = scmp.lt.s32.totalorder %s17_s13, %s17_s13 }
   0xa   :  { %p490_p3 = scmp.ne.s32.totalorder %s17_s13, %s489_s21  ;;  %p495_p5 = scmp.lt.s32.totalorder %s489_s21, %s489_s21 }
   0xc   :  { %p496_p6 = por %p495_p5, %p494_p4 }
   0xe   :  { %p497_p7 = pnand %p496_p6, %p490_p3 }
  0x10   :  { %500 = shalt.err (!%p497_p7)
}
  0x11   :  { %s552_s22 = smov 512   ;;  %s553_s23 = smov 32  }
  0x12   :  { %22 = dma.hbm_to_vmem [thread:$0]  %s645_s0, 9216, %s17_s13, [#allocation3], %s552_s22, %s552_s22, %s553_s23  }
  0x13   :  { %s554_s26 = smov [#allocation5]   ;;  %s501_s30 = scalar_lea.hbm %s646_s1, 1024 }
  0x14   :  { %s28_s27 = sshll.u32 %s554_s26, 4  ;;  %p502_p8 = scmp.ne.s32.totalorder %s646_s1, %s501_s30  ;;  %s29_s27 = int_to_ptr.vmem [resolvable:$true] %s28_s27 }
  0x15   :  { %p505_p9 = scmp.lt.u32.totalorder %s501_s30, %s646_s1 }
  0x17   :  { %p507_p10 = pnand %p505_p9, %p502_p8 }
  0x19   :  { %510 = shalt.err (!%p507_p10)
}
  0x1a   :  { %s511_s8 = scalar_lea.vmem %s29_s27, 1024  ;;  %p516_p12 = scmp.lt.s32.totalorder %s29_s27, %s29_s27 }
  0x1b   :  { %p512_p11 = scmp.ne.s32.totalorder %s29_s27, %s511_s8  ;;  %p517_p13 = scmp.lt.s32.totalorder %s511_s8, %s511_s8 }
  0x1d   :  { %p518_p0 = por %p517_p13, %p516_p12 }
  0x1f   :  { %p519_p1 = pnand %p518_p0, %p512_p11 }
  0x21   :  { %522 = shalt.err (!%p519_p1)
}
  0x22   :  { %s555_s0 = smov 256   ;;  %s556_s9 = smov 16  }
  0x23   :  { %34 = dma.hbm_to_vmem [thread:$0]  %s646_s1, 1024, %s29_s27, [#allocation6], %s555_s0, %s555_s0, %s556_s9  }
  0x24   :  { %545 = dma.done.wait [#allocation3], 9216  }
  0x25   :  { %546 = vsyncadd [#allocation3], 4294958080 }
  0x26   :  { %547 = dma.done.wait [#allocation6], 1024  }
  0x27   :  { %548 = vsyncadd [#allocation6], 4294966272  ;;  %v557_v0 = vmov 0   ;;  %v52_v1 = vld [vmem:[#allocation2 + $0x8] sm:$0xff]  ;;  %v54_v3 = vld [vmem:[#allocation2 + $0x18] sm:$0xff]  ;;  %vm147_vm0 = vcmask 130048  }
  0x28   :  { %477 = vset.pattern.permute.xlu0 %v557_v0  ;;  %478 = vset.pattern.permute.xlu1 %v557_v0  ;;  %v56_v2 = vld [vmem:[#allocation2 + $0x28] sm:$0xff]  ;;  %v58_v5 = vld [vmem:[#allocation2 + $0x38] sm:$0xff]  ;;  %v51_v6 = vld [vmem:[#allocation2] sm:$0xff]  ;;  %vm357_vm1 = vcmask 64512  }
  0x29   :  { %v397_v4 = vpack.c.bf16 %v56_v2, %v52_v1  ;;  %v55_v7 = vld [vmem:[#allocation2 + $0x20] sm:$0xff]  ;;  %v433_v8 = vpack.c.bf16 %v58_v5, %v54_v3  ;;  %v53_v10 = vld [vmem:[#allocation2 + $0x10] sm:$0xff]  ;;  %v60_v12 = vld [vmem:[#allocation2 + $0x48] sm:$0xff] }
  0x2a   :  { %v399_v9 = vpack.c.bf16 %v55_v7, %v51_v6  ;;  %v57_v11 = vld [vmem:[#allocation2 + $0x30] sm:$0xff]  ;;  %v64_v14 = vld [vmem:[#allocation2 + $0x68] sm:$0xff]  ;;  %v62_v15 = vld [vmem:[#allocation2 + $0x58] sm:$0xff] }
  0x2b   :  { %398 = vmatprep.subr.bf16.mxu0 %v397_v4  ;;  %v435_v13 = vpack.c.bf16 %v57_v11, %v53_v10  ;;  %v66_v16 = vld [vmem:[#allocation2 + $0x78] sm:$0xff]  ;;  %434 = vmatprep.subr.bf16.mxu1 %v433_v8  ;;  %v401_v17 = vpack.c.bf16 %v64_v14, %v60_v12  ;;  %v59_v19 = vld [vmem:[#allocation2 + $0x40] sm:$0xff]  ;;  %v61_v21 = vld [vmem:[#allocation2 + $0x50] sm:$0xff] }
  0x2c   :  { %400 = vmatpush1.bf16.msra.mxu0 %v399_v9  ;;  %v437_v18 = vpack.c.bf16 %v66_v16, %v62_v15  ;;  %v63_v20 = vld [vmem:[#allocation2 + $0x60] sm:$0xff]  ;;  %v65_v23 = vld [vmem:[#allocation2 + $0x70] sm:$0xff]  ;;  %v68_v24 = vld [vmem:[#allocation2 + $0x88] sm:$0xff] }
  0x2d   :  { %436 = vmatpush1.bf16.msra.mxu1 %v435_v13  ;;  %v403_v22 = vpack.c.bf16 %v63_v20, %v59_v19  ;;  %v72_v25 = vld [vmem:[#allocation2 + $0xa8] sm:$0xff]  ;;  %402 = vmatprep.subr.bf16.mxu0 %v401_v17  ;;  %v439_v26 = vpack.c.bf16 %v65_v23, %v61_v21  ;;  %v70_v28 = vld [vmem:[#allocation2 + $0x98] sm:$0xff]  ;;  %v67_v30 = vld [vmem:[#allocation2 + $0x80] sm:$0xff] }
  0x2e   :  { %438 = vmatprep.subr.bf16.mxu1 %v437_v18  ;;  %v405_v27 = vpack.c.bf16 %v72_v25, %v68_v24  ;;  %v74_v29 = vld [vmem:[#allocation2 + $0xb8] sm:$0xff]  ;;  %v71_v32 = vld [vmem:[#allocation2 + $0xa0] sm:$0xff]  ;;  %v69_v33 = vld [vmem:[#allocation2 + $0x90] sm:$0xff] }
  0x2f   :  { %v441_v31 = vpack.c.bf16 %v74_v29, %v70_v28  ;;  %v73_v34 = vld [vmem:[#allocation2 + $0xb0] sm:$0xff]  ;;  %v407_v35 = vpack.c.bf16 %v71_v32, %v67_v30  ;;  %v76_v36 = vld [vmem:[#allocation2 + $0xc8] sm:$0xff]  ;;  %v78_v38 = vld [vmem:[#allocation2 + $0xd8] sm:$0xff] }
  0x30   :  { %404 = vmatpush1.bf16.msra.mxu0 %v403_v22  ;;  %v80_v37 = vld [vmem:[#allocation2 + $0xe8] sm:$0xff]  ;;  %v443_v39 = vpack.c.bf16 %v73_v34, %v69_v33  ;;  %v82_v41 = vld [vmem:[#allocation2 + $0xf8] sm:$0xff]  ;;  %v75_v42 = vld [vmem:[#allocation2 + $0xc0] sm:$0xff] }
  0x31   :  { %440 = vmatpush1.bf16.msra.mxu1 %v439_v26  ;;  %406 = vmatprep.subr.bf16.mxu0 %v405_v27  ;;  %v409_v40 = vpack.c.bf16 %v80_v37, %v76_v36  ;;  %v79_v43 = vld [vmem:[#allocation2 + $0xe0] sm:$0xff]  ;;  %v445_v44 = vpack.c.bf16 %v82_v41, %v78_v38  ;;  %v77_v45 = vld [vmem:[#allocation2 + $0xd0] sm:$0xff]  ;;  %v84_v47 = vld [vmem:[#allocation2 + $0x108] sm:$0xff] }
  0x32   :  { %442 = vmatprep.subr.bf16.mxu1 %v441_v31  ;;  %v81_v46 = vld [vmem:[#allocation2 + $0xf0] sm:$0xff]  ;;  %v88_v48 = vld [vmem:[#allocation2 + $0x128] sm:$0xff]  ;;  %v86_v49 = vld [vmem:[#allocation2 + $0x118] sm:$0xff]  ;;  %v411_v51 = vpack.c.bf16 %v79_v43, %v75_v42 }
  0x33   :  { %v90_v50 = vld [vmem:[#allocation2 + $0x138] sm:$0xff]  ;;  %v447_v52 = vpack.c.bf16 %v81_v46, %v77_v45  ;;  %v413_v53 = vpack.c.bf16 %v88_v48, %v84_v47  ;;  %v83_v54 = vld [vmem:[#allocation2 + $0x100] sm:$0xff]  ;;  %v85_v56 = vld [vmem:[#allocation2 + $0x110] sm:$0xff] }
  0x34   :  { %408 = vmatpush1.bf16.msra.mxu0 %v407_v35  ;;  %v87_v55 = vld [vmem:[#allocation2 + $0x120] sm:$0xff]  ;;  %v449_v57 = vpack.c.bf16 %v90_v50, %v86_v49  ;;  %v89_v58 = vld [vmem:[#allocation2 + $0x130] sm:$0xff]  ;;  %v92_v59 = vld [vmem:[#allocation2 + $0x148] sm:$0xff] }
  0x35   :  { %444 = vmatpush1.bf16.msra.mxu1 %v443_v39  ;;  %410 = vmatprep.subr.bf16.mxu0 %v409_v40  ;;  %v96_v60 = vld [vmem:[#allocation2 + $0x168] sm:$0xff]  ;;  %v94_v61 = vld [vmem:[#allocation2 + $0x158] sm:$0xff]  ;;  %v415_v63 = vpack.c.bf16 %v87_v55, %v83_v54  ;;  %v451_v0 = vpack.c.bf16 %v89_v58, %v85_v56  ;;  %v91_v2 = vld [vmem:[#allocation2 + $0x140] sm:$0xff] }
  0x36   :  { %446 = vmatprep.subr.bf16.mxu1 %v445_v44  ;;  %v98_v62 = vld [vmem:[#allocation2 + $0x178] sm:$0xff]  ;;  %v417_v1 = vpack.c.bf16 %v96_v60, %v92_v59  ;;  %v95_v3 = vld [vmem:[#allocation2 + $0x160] sm:$0xff]  ;;  %v93_v4 = vld [vmem:[#allocation2 + $0x150] sm:$0xff] }
  0x37   :  { %v453_v5 = vpack.c.bf16 %v98_v62, %v94_v61  ;;  %v97_v6 = vld [vmem:[#allocation2 + $0x170] sm:$0xff]  ;;  %v100_v7 = vld [vmem:[#allocation2 + $0x188] sm:$0xff]  ;;  %v102_v9 = vld [vmem:[#allocation2 + $0x198] sm:$0xff]  ;;  %v419_v11 = vpack.c.bf16 %v95_v3, %v91_v2 }
  0x38   :  { %412 = vmatpush1.bf16.msra.mxu0 %v411_v51  ;;  %v104_v8 = vld [vmem:[#allocation2 + $0x1a8] sm:$0xff]  ;;  %v106_v10 = vld [vmem:[#allocation2 + $0x1b8] sm:$0xff]  ;;  %v455_v12 = vpack.c.bf16 %v97_v6, %v93_v4  ;;  %v99_v14 = vld [vmem:[#allocation2 + $0x180] sm:$0xff] }
  0x39   :  { %448 = vmatpush1.bf16.msra.mxu1 %v447_v52  ;;  %414 = vmatprep.subr.bf16.mxu0 %v413_v53  ;;  %v421_v13 = vpack.c.bf16 %v104_v8, %v100_v7  ;;  %v103_v15 = vld [vmem:[#allocation2 + $0x1a0] sm:$0xff]  ;;  %v101_v16 = vld [vmem:[#allocation2 + $0x190] sm:$0xff]  ;;  %v457_v17 = vpack.c.bf16 %v106_v10, %v102_v9  ;;  %v108_v19 = vld [vmem:[#allocation2 + $0x1c8] sm:$0xff] }
  0x3a   :  { %450 = vmatprep.subr.bf16.mxu1 %v449_v57  ;;  %v105_v18 = vld [vmem:[#allocation2 + $0x1b0] sm:$0xff]  ;;  %v112_v20 = vld [vmem:[#allocation2 + $0x1e8] sm:$0xff]  ;;  %v110_v21 = vld [vmem:[#allocation2 + $0x1d8] sm:$0xff]  ;;  %v423_v23 = vpack.c.bf16 %v103_v15, %v99_v14 }
  0x3b   :  { %v114_v22 = vld [vmem:[#allocation2 + $0x1f8] sm:$0xff]  ;;  %v107_v24 = vld [vmem:[#allocation2 + $0x1c0] sm:$0xff]  ;;  %v44_v25 = vld [vmem:[#allocation5 + $0x8] sm:$0xff]  ;;  %v459_v26 = vpack.c.bf16 %v105_v18, %v101_v16  ;;  %v425_v27 = vpack.c.bf16 %v112_v20, %v108_v19 }
  0x3c   :  { %416 = vmatpush1.bf16.msra.mxu0 %v415_v63  ;;  %v111_v28 = vld [vmem:[#allocation2 + $0x1e0] sm:$0xff]  ;;  %v109_v29 = vld [vmem:[#allocation2 + $0x1d0] sm:$0xff]  ;;  %v461_v31 = vpack.c.bf16 %v114_v22, %v110_v21  ;;  %v116_v32 = vld [vmem:[#allocation2 + $0x208] sm:$0xff]  ;;  %389 = vmatprep.mubr.msk.f32.mxu0 %vm147_vm0, %v44_v25 }
  0x3d   :  { %452 = vmatpush1.bf16.msra.mxu1 %v451_v0  ;;  %418 = vmatprep.subr.bf16.mxu0 %v417_v1  ;;  %v113_v30 = vld [vmem:[#allocation2 + $0x1f0] sm:$0xff]  ;;  %v120_v33 = vld [vmem:[#allocation2 + $0x228] sm:$0xff]  ;;  %v123_v34 = vld [vmem:[%s647_s2] sm:$0xff]  ;;  %v427_v38 = vpack.c.bf16 %v111_v28, %v107_v24 }
  0x3e   :  { %454 = vmatprep.subr.bf16.mxu1 %v453_v5  ;;  %v118_v35 = vld [vmem:[#allocation2 + $0x218] sm:$0xff]  ;;  %393 = vmatprep.mubr.msk.f32.mxu1 %vm147_vm0, %v44_v25  ;;  %v125_v37 = vld [vmem:[%s647_s2 + $0x10] sm:$0xff]  ;;  %v124_v39 = vld [vmem:[%s647_s2 + $0x8] sm:$0xff]  ;;  %v463_v40 = vpack.c.bf16 %v113_v30, %v109_v29  ;;  %v429_v41 = vpack.c.bf16 %v120_v33, %v116_v32 }
  0x3f   :  { %v122_v36 = vld [vmem:[#allocation2 + $0x238] sm:$0xff]  ;;  %129 = vperm.xlu0 %477, %v123_v34   ;;  %139 = vperm.xlu1 %478, %v125_v37   ;;  %v115_v42 = vld [vmem:[#allocation2 + $0x200] sm:$0xff]  ;;  %v117_v46 = vld [vmem:[#allocation2 + $0x210] sm:$0xff] }
  0x40   :  { %420 = vmatpush1.bf16.msra.mxu0 %v419_v11  ;;  %v119_v43 = vld [vmem:[#allocation2 + $0x220] sm:$0xff]  ;;  %v126_v44 = vld [vmem:[%s647_s2 + $0x18] sm:$0xff]  ;;  %v465_v45 = vpack.c.bf16 %v122_v36, %v118_v35  ;;  %v121_v47 = vld [vmem:[#allocation2 + $0x230] sm:$0xff]  ;;  %s558_s2 = smov [#allocation7]  }
  0x41   :  { %456 = vmatpush1.bf16.msra.mxu1 %v455_v12  ;;  %422 = vmatprep.subr.bf16.mxu0 %v421_v13  ;;  %v431_v48 = vpack.c.bf16 %v119_v43, %v115_v42  ;;  %v467_v49 = vpack.c.bf16 %v121_v47, %v117_v46  ;;  %v43_v50 = vld [vmem:[#allocation5] sm:$0xff]  ;;  %v46_v51 = vld [vmem:[#allocation5 + $0x18] sm:$0xff]  ;;  %v45_v52 = vld [vmem:[#allocation5 + $0x10] sm:$0xff]  ;;  %s376_s19 = sshll.u32 %s558_s2, 4  ;;  %s377_s19 = int_to_ptr.vmem [resolvable:$true] %s376_s19 }
  0x42   :  { %458 = vmatprep.subr.bf16.mxu1 %v457_v17  ;;  %v48_v53 = vld [vmem:[#allocation5 + $0x28] sm:$0xff]  ;;  %v47_v54 = vld [vmem:[#allocation5 + $0x20] sm:$0xff]  ;;  %v50_v55 = vld [vmem:[#allocation5 + $0x38] sm:$0xff]  ;;  %s523_s20 = scalar_lea.vmem %s377_s19, 2048  ;;  %p528_p3 = scmp.lt.s32.totalorder %s377_s19, %s377_s19 }
  0x43   :  { %134 = vperm.xlu0 %477, %v124_v39   ;;  %144 = vperm.xlu1 %478, %v126_v44   ;;  %v49_v56 = vld [vmem:[#allocation5 + $0x30] sm:$0xff]  ;;  %p524_p2 = scmp.ne.s32.totalorder %s377_s19, %s523_s20  ;;  %p529_p4 = scmp.lt.s32.totalorder %s523_s20, %s523_s20 }
  0x44   :  { %424 = vmatpush1.bf16.msra.mxu0 %v423_v23 }
  0x45   :  { %460 = vmatpush1.bf16.msra.mxu1 %v459_v26  ;;  %426 = vmatprep.subr.bf16.mxu0 %v425_v27  ;;  %p530_p5 = por %p529_p4, %p528_p3 }
  0x46   :  { %462 = vmatprep.subr.bf16.mxu1 %v461_v31 }
  0x47   :  { %p531_p6 = pnand %p530_p5, %p524_p2 }
  0x48   :  { %428 = vmatpush1.bf16.msra.mxu0 %v427_v38 }
  0x49   :  { %464 = vmatpush1.bf16.msra.mxu1 %v463_v40  ;;  %430 = vmatprep.subr.bf16.mxu0 %v429_v41 }
  0x4a   :  { %466 = vmatprep.subr.bf16.mxu1 %v465_v45 }
  0x4c   :  { %432 = vmatpush1.bf16.msra.mxu0 %v431_v48 }
  0x4d   :  { %468 = vmatpush1.bf16.msra.mxu1 %v467_v49 }
  0x4f   :  { %225 = vmatmul.mubr.f32.vlgmr.msra.gmra.mrb[0].mxu0 %v43_v50 }
  0x50   :  { %314 = vmatmul.mubr.f32.vlgmr.msra.gmra.mrb[0].mxu1 %v43_v50  ;;  %390 = vmatprep.mubr.msk.f32.mxu0 %vm147_vm0, %v46_v51 }
  0x51   :  { %394 = vmatprep.mubr.msk.f32.mxu1 %vm147_vm0, %v46_v51 }
  0x53   :  { %231 = vmatmul.mubr.f32.gmra.mrb[2].mxu0 %v45_v52 }
  0x54   :  { %320 = vmatmul.mubr.f32.gmra.mrb[2].mxu1 %v45_v52  ;;  %391 = vmatprep.mubr.msk.f32.mxu0 %vm147_vm0, %v48_v53 }
  0x55   :  { %395 = vmatprep.mubr.msk.f32.mxu1 %vm147_vm0, %v48_v53 }
  0x57   :  { %237 = vmatmul.mubr.f32.gmra.mrb[4].mxu0 %v47_v54 }
  0x58   :  { %326 = vmatmul.mubr.f32.gmra.mrb[4].mxu1 %v47_v54  ;;  %392 = vmatprep.mubr.msk.f32.mxu0 %vm147_vm0, %v50_v55 }
  0x59   :  { %396 = vmatprep.mubr.msk.f32.mxu1 %vm147_vm0, %v50_v55 }
  0x5b   :  { %243 = vmatmul.mubr.f32.gmra.mrb[6].mxu0 %v49_v56 }
  0x5c   :  { %332 = vmatmul.mubr.f32.gmra.mrb[6].mxu1 %v49_v56 }
  0xbe   :  { %v130_v57 = vpop.permute.xlu0 %129  ;;  %v140_v12 = vpop.permute.xlu1 %139 }
  0xc2   :  { %v135_v1 = vpop.permute.xlu0 %134  ;;  %v145_v30 = vpop.permute.xlu1 %144 }
 0x122   :  { %v226_v58 = vpop.f32.mrb[0].mxu0 }
 0x123   :  { %v227_v59 = vadd.f32 %v226_v58, %v130_v57  ;;  %v315_v60 = vpop.f32.mrb[0].mxu1  ;;  %v228_v61 = vpop.f32.mrb[1].mxu0 }
 0x124   :  { %v316_v62 = vadd.f32 %v315_v60, %v130_v57  ;;  %v229_v63 = vadd.f32 %v228_v61, %v130_v57  ;;  %v317_v0 = vpop.f32.mrb[1].mxu1 }
 0x125   :  { %v338_v2 = vmax.f32 %v227_v59, 0.0  ;;  %v318_v3 = vadd.f32 %v317_v0, %v130_v57 }
 0x126   :  { %v340_v4 = vmax.f32 %v316_v62, 0.0  ;;  %v339_v5 = vmax.f32 %v229_v63, 0.0  ;;  %v232_v6 = vpop.f32.mrb[2].mxu0 }
 0x127   :  { %354 = vst [vmem:[#allocation7] sm:$0xff] %v338_v2  ;;  %v341_v7 = vmax.f32 %v318_v3, 0.0  ;;  %v233_v8 = vadd.f32 %v232_v6, %v135_v1  ;;  %v321_v9 = vpop.f32.mrb[2].mxu1  ;;  %v234_v10 = vpop.f32.mrb[3].mxu0 }
 0x128   :  { %356 = vst [vmem:[#allocation7 + $0x10] sm:$0xff] %v340_v4  ;;  %355 = vst [vmem:[#allocation7 + $0x8] sm:$0xff] %v339_v5  ;;  %v322_v11 = vadd.f32 %v321_v9, %v135_v1  ;;  %v235_v13 = vadd.f32 %v234_v10, %v135_v1  ;;  %v323_v14 = vpop.f32.mrb[3].mxu1 }
 0x129   :  { %358 = vst.msk [vmem:[#allocation7 + $0x18] sm:$0xff] %vm357_vm1, %v341_v7  ;;  %v342_v15 = vmax.f32 %v233_v8, 0.0  ;;  %v324_v16 = vadd.f32 %v323_v14, %v135_v1 }
 0x12a   :  { %v344_v17 = vmax.f32 %v322_v11, 0.0  ;;  %v343_v18 = vmax.f32 %v235_v13, 0.0  ;;  %v238_v19 = vpop.f32.mrb[4].mxu0 }
 0x12b   :  { %359 = vst [vmem:[#allocation7 + $0x20] sm:$0xff] %v342_v15  ;;  %v345_v20 = vmax.f32 %v324_v16, 0.0  ;;  %v239_v21 = vadd.f32 %v238_v19, %v140_v12  ;;  %v327_v22 = vpop.f32.mrb[4].mxu1  ;;  %v240_v23 = vpop.f32.mrb[5].mxu0 }
 0x12c   :  { %361 = vst [vmem:[#allocation7 + $0x30] sm:$0xff] %v344_v17  ;;  %360 = vst [vmem:[#allocation7 + $0x28] sm:$0xff] %v343_v18  ;;  %v328_v24 = vadd.f32 %v327_v22, %v140_v12  ;;  %v241_v25 = vadd.f32 %v240_v23, %v140_v12  ;;  %v329_v26 = vpop.f32.mrb[5].mxu1 }
 0x12d   :  { %362 = vst.msk [vmem:[#allocation7 + $0x38] sm:$0xff] %vm357_vm1, %v345_v20  ;;  %v346_v27 = vmax.f32 %v239_v21, 0.0  ;;  %v330_v28 = vadd.f32 %v329_v26, %v140_v12 }
 0x12e   :  { %v348_v29 = vmax.f32 %v328_v24, 0.0  ;;  %v347_v31 = vmax.f32 %v241_v25, 0.0  ;;  %v244_v32 = vpop.f32.mrb[6].mxu0 }
 0x12f   :  { %363 = vst [vmem:[#allocation7 + $0x40] sm:$0xff] %v346_v27  ;;  %v349_v33 = vmax.f32 %v330_v28, 0.0  ;;  %v245_v34 = vadd.f32 %v244_v32, %v145_v30  ;;  %v333_v35 = vpop.f32.mrb[6].mxu1  ;;  %v246_v36 = vpop.f32.mrb[7].mxu0 }
 0x130   :  { %365 = vst [vmem:[#allocation7 + $0x50] sm:$0xff] %v348_v29  ;;  %364 = vst [vmem:[#allocation7 + $0x48] sm:$0xff] %v347_v31  ;;  %v334_v37 = vadd.f32 %v333_v35, %v145_v30  ;;  %v247_v38 = vadd.f32 %v246_v36, %v145_v30  ;;  %v335_v39 = vpop.f32.mrb[7].mxu1 }
 0x131   :  { %366 = vst.msk [vmem:[#allocation7 + $0x58] sm:$0xff] %vm357_vm1, %v349_v33  ;;  %v350_v40 = vmax.f32 %v245_v34, 0.0  ;;  %v336_v41 = vadd.f32 %v335_v39, %v145_v30 }
 0x132   :  { %v352_v42 = vmax.f32 %v334_v37, 0.0  ;;  %v351_v43 = vmax.f32 %v247_v38, 0.0 }
 0x133   :  { %367 = vst [vmem:[#allocation7 + $0x60] sm:$0xff] %v350_v40  ;;  %v353_v44 = vmax.f32 %v336_v41, 0.0 }
 0x134   :  { %369 = vst [vmem:[#allocation7 + $0x70] sm:$0xff] %v352_v42  ;;  %368 = vst [vmem:[#allocation7 + $0x68] sm:$0xff] %v351_v43 }
 0x135   :  { %370 = vst.msk [vmem:[#allocation7 + $0x78] sm:$0xff] %vm357_vm1, %v353_v44 }
 0x136   :  { %534 = shalt.err (!%p531_p6)
}
 0x137   :  { %s535_s25 = scalar_lea.hbm %s648_s3, 2048 }
 0x138   :  { %p536_p7 = scmp.ne.s32.totalorder %s648_s3, %s535_s25  ;;  %p539_p8 = scmp.lt.u32.totalorder %s535_s25, %s648_s3 }
 0x13a   :  { %p541_p9 = pnand %p539_p8, %p536_p7 }
 0x13c   :  { %544 = shalt.err (!%p541_p9)
}
 0x13d   :  { %382 = dma.vmem_to_hbm [thread:$0]  %s377_s19, 2048, %s648_s3, [#allocation4], %s552_s22, %s552_s22, %s553_s23  }
 0x13e   :  { %549 = dma.done.wait [#allocation4], 2048  }
 0x13f   :  { %550 = vsyncadd [#allocation4], 4294965248 }
 0x140   :  { %386 = vsyncpa [#allocation3], 1 }
 0x141   :  { %387 = vsyncpa [#allocation6], 1 }
 0x142   :  { %388 = vsyncpa [#allocation4], 1 }

</bundles_post_ra>
